<compile_context>
chip_gen: v6e
topology: v6e:2x2x1
jax: 0.10.0
libtpu: 0.0.40
codegen_flags: <defaults>
</compile_context>

<pallas_src>
import functools

import jax
import jax.numpy as jnp
import numpy as np
from jax import lax
from jax.experimental import pallas as pl
from jax.experimental.pallas import tpu as pltpu


def _edge_drop_compact_kernel(pos_ref, edge_ref, out_ref):
    """Front-compacts the kept edges of one eb-edge block.

    pos_ref  : VMEM (eb, 1) int32 -- local output slot of each edge in this
               block (-1 for dropped edges), precomputed outside.
    edge_ref : VMEM (2, eb) int32 -- this block's edges (row 0 = src, 1 = dst).
    out_ref  : VMEM (2, eb) int32 -- block-local compacted edges (column j holds
               the j-th kept edge of the block; unused columns stay 0 and are
               never read by the stitch).
    """
    eb = edge_ref.shape[1]

    # Transposed one-hot scatter: scat_t[i, j] = 1 iff edge i lands in local
    # slot j.  pos is an (eb, 1) column, so this is a cheap lane-broadcast
    # against a lane iota.  Built directly in bf16 for the native MXU path.
    slot = lax.broadcasted_iota(jnp.int32, (eb, eb), 1)
    scat_t = (pos_ref[...] == slot).astype(jnp.bfloat16)            # (eb, eb)

    # Pack src/dst ids as 8-bit chunks (exact in bf16): row 2*q + t holds chunk
    # q of id row t.  Built with broadcasts + selects (no concat, no var-shift).
    e = edge_ref[...]                                                # (2, eb)
    row = lax.broadcasted_iota(jnp.int32, (8, eb), 0)
    sel = jnp.where((row & 1) == 0,
                    jnp.broadcast_to(e[0:1, :], (8, eb)),
                    jnp.broadcast_to(e[1:2, :], (8, eb)))
    q = row >> 1
    chunks = jnp.where(q == 0, sel & 0xFF,
             jnp.where(q == 1, (sel >> 8) & 0xFF,
             jnp.where(q == 2, (sel >> 16) & 0xFF, (sel >> 24) & 0xFF)))
    chunks = chunks.astype(jnp.bfloat16)                             # (8, eb)

    # Single bf16 MXU matmul compacts all 8 chunk rows at once; the scatter
    # matrix streams through the MXU exactly once, output slots on lanes.
    comp = jnp.dot(chunks, scat_t,
                   preferred_element_type=jnp.float32).astype(jnp.int32)

    # Recombine the 8-bit chunks into int32 node ids (bit-exact via shift+or).
    src = comp[0:1] | (comp[2:3] << 8) | (comp[4:5] << 16) | (comp[6:7] << 24)
    dst = comp[1:2] | (comp[3:4] << 8) | (comp[5:6] << 16) | (comp[7:8] << 24)
    out_ref[0:1, :] = src
    out_ref[1:2, :] = dst


@functools.partial(jax.jit, static_argnames=("p", "block_edges"))
def edge_drop_edges(edge_index, key, p=0.05, block_edges=256):
    """Drop each edge independently with probability p.

    edge_index: int32 [2, E].  Returns (padded [2, E] with kept edges
    front-compacted in original order and a -1 tail, num_kept, keep_mask [E]).
    """
    edge_index = jnp.asarray(edge_index, dtype=jnp.int32)
    assert edge_index.ndim == 2 and edge_index.shape[0] == 2
    E = edge_index.shape[1]

    # Block size: multiple of 128 lanes, capped at 512 (one-hot work is O(E*eb)).
    eb = (max(128, min(int(block_edges), 512)) // 128) * 128
    nb = pl.cdiv(E, eb)
    e_pad = nb * eb
    pad = e_pad - E

    # keep  <=>  uniform >= p  <=>  bits >= round(p * 2^32)   (integer compare)
    threshold = int(round(p * (1 << 32)))
    threshold = min(max(threshold, 0), (1 << 32) - 1)
    if pad > 0:
        threshold = max(threshold, 1)   # padded lanes draw 0 -> always dropped

    bits = jax.random.bits(key, (e_pad,), dtype=jnp.uint32)
    lane = jnp.arange(e_pad, dtype=jnp.int32)
    bits = jnp.where(lane < E, bits, jnp.uint32(0))

    # Cheap O(E) bookkeeping outside the kernel: per-block keep counts, their
    # exclusive prefix (global block offsets), and per-edge local slots.
    keep = bits >= jnp.uint32(threshold)                          # (e_pad,)
    keep_blk = keep.reshape(nb, eb)
    incl = jnp.cumsum(keep_blk.astype(jnp.int32), axis=1)         # (nb, eb)
    counts = incl[:, -1]                                          # (nb,)
    offsets = (jnp.cumsum(counts) - counts).astype(jnp.int32)     # exclusive
    total = jnp.sum(counts).astype(jnp.int32)
    pos_col = jnp.where(keep_blk, incl - 1, -1).reshape(e_pad, 1).astype(jnp.int32)

    # Edges kept lane-dense: (2, E_pad), edge axis on lanes.
    edges_pad = jnp.zeros((2, e_pad), dtype=jnp.int32).at[:, :E].set(edge_index)

    block_out = pl.pallas_call(
        _edge_drop_compact_kernel,
        out_shape=jax.ShapeDtypeStruct((2, e_pad), jnp.int32),
        grid=(nb,),
        in_specs=[
            pl.BlockSpec((eb, 1), lambda b: (b, 0)),      # local slots (column)
            pl.BlockSpec((2, eb), lambda b: (0, b)),      # edge block, lane-dense
        ],
        out_specs=pl.BlockSpec((2, eb), lambda b: (0, b)),  # block-local output
        compiler_params=pltpu.CompilerParams(
            # Blocks are fully independent -> safe for megacore on v7x.
            dimension_semantics=("parallel",),
        ),
    )(pos_col, edges_pad)

    # Stitch block-local compacted chunks into global front-compacted order:
    # block b contributes counts[b] edges starting at global column offsets[b].
    # Cheap O(E) gather; tail (>= total) padded with -1.
    g = jnp.arange(e_pad, dtype=jnp.int32)
    blk = jnp.clip(jnp.searchsorted(offsets, g, side="right") - 1, 0, nb - 1)
    src_col = jnp.clip(blk * eb + (g - offsets[blk]), 0, e_pad - 1)
    stitched = jnp.take(block_out, src_col, axis=1)
    out = jnp.where(g[None, :] < total, stitched, -1)

    return out[:, :E], total, keep[:E]


class EdgeDrop:
    """JAX/Pallas port of the PyTorch EdgeDrop transform."""

    def __init__(self, p=0.05, block_edges=256):
        self.p = p
        self.block_edges = block_edges

    def __call__(self, data, key):
        x, y, edge_index = data["x"], data["y"], data["edge_index"]
        n = x.shape[0]
        train_mask = jnp.ones((n,), dtype=jnp.bool_)
        test_mask = jnp.ones((n,), dtype=jnp.bool_)
        new_edges, num_edges, _ = edge_drop_edges(
            edge_index, key, p=self.p, block_edges=self.block_edges)
        # TODO(synk): torch's forward returns a dynamically-shaped edge_index;
        # JAX needs static shapes, so kept edges are front-compacted with -1
        # padding and `num_edges` gives the true count.
        return {
            "x": x,
            "y": y,
            "edge_index": new_edges,
            "num_edges": num_edges,
            "train_mask": train_mask,
            "test_mask": test_mask,
        }


if __name__ == "__main__":
    root = jax.random.PRNGKey(0)
    kx, ky, ke, kdrop = jax.random.split(root, 4)

    N, F, E = 16, 8, 300
    x = jax.random.normal(kx, (N, F), dtype=jnp.float32)
    y = jax.random.randint(ky, (N,), 0, 4, dtype=jnp.int32)
    edge_index = jax.random.randint(ke, (2, E), 0, N, dtype=jnp.int32)

    data = {"x": x, "y": y, "edge_index": edge_index}

    # Direct kernel call with eb=128 so the grid has multiple (3) steps and the
    # last block contains padding (E=300 is not a multiple of 128).
    new_edges, num_edges, keep_mask = edge_drop_edges(
        edge_index, kdrop, p=0.05, block_edges=128)
    jax.block_until_ready((new_edges, num_edges, keep_mask))

    # Reference check against the same keep mask.
    keep_np = np.asarray(keep_mask)
    kept_cols = np.nonzero(keep_np)[0]
    ref = np.asarray(edge_index)[:, kept_cols]
    out_np = np.asarray(new_edges)
    n_kept = int(num_edges)
    assert out_np.shape == (2, E)
    assert n_kept == kept_cols.shape[0], (n_kept, kept_cols.shape[0])
    assert np.array_equal(out_np[:, :n_kept], ref)
    assert np.all(out_np[:, n_kept:] == -1)

    # Module-style call (same key -> identical result).
    mod = EdgeDrop(p=0.05, block_edges=128)
    out = mod(data, kdrop)
    jax.block_until_ready(out)
    assert np.array_equal(np.asarray(out["edge_index"]), out_np)
    assert int(out["num_edges"]) == n_kept

    print("KERNEL_OK")
</pallas_src>

<mosaic_0001>
module attributes {stable_mosaic.version = 11 : i64} {
  func.func @_edge_drop_compact_kernel(%arg0: i32, %arg1: memref<128x1xi32, #tpu.memory_space<vmem>>, %arg2: memref<2x128xi32, #tpu.memory_space<vmem>>, %arg3: memref<2x128xi32, #tpu.memory_space<vmem>>) attributes {dimension_semantics = [#tpu.dimension_semantics<parallel>], iteration_bounds = array<i64: 3>, scalar_prefetch = 0 : i64, scratch_operands = 0 : i64, tpu.core_type = #tpu.core_type<tc>, window_params = [{transform_indices = @transform_0, window_bounds = array<i64: 128, 1>}, {transform_indices = @transform_1, window_bounds = array<i64: 2, 128>}, {transform_indices = @transform_2, window_bounds = array<i64: 2, 128>}]} {
    %0 = tpu.iota {dimensions = array<i32: 1>} : vector<128x128xi32>
    %c0 = arith.constant 0 : index
    %c0_0 = arith.constant 0 : index
    %1 = vector.load %arg1[%c0, %c0_0] : memref<128x1xi32, #tpu.memory_space<vmem>>, vector<128x1xi32>
    %2 = vector.broadcast %1 : vector<128x1xi32> to vector<128x128xi32>
    %3 = arith.cmpi eq, %2, %0 : vector<128x128xi32>
    %4 = arith.extui %3 : vector<128x128xi1> to vector<128x128xi32>
    %5 = arith.sitofp %4 : vector<128x128xi32> to vector<128x128xf32>
    %6 = arith.truncf %5 : vector<128x128xf32> to vector<128x128xbf16>
    %c0_1 = arith.constant 0 : index
    %c0_2 = arith.constant 0 : index
    %7 = vector.load %arg2[%c0_1, %c0_2] : memref<2x128xi32, #tpu.memory_space<vmem>>, vector<2x128xi32>
    %8 = tpu.iota {dimensions = array<i32: 0>} : vector<8x128xi32>
    %c1_i32 = arith.constant 1 : i32
    %9 = vector.broadcast %c1_i32 : i32 to vector<8x128xi32>
    %10 = arith.andi %8, %9 : vector<8x128xi32>
    %c0_i32 = arith.constant 0 : i32
    %11 = vector.broadcast %c0_i32 : i32 to vector<8x128xi32>
    %12 = arith.cmpi eq, %10, %11 : vector<8x128xi32>
    %13 = vector.extract_strided_slice %7 {offsets = [0, 0], sizes = [1, 128], strides = [1, 1]} : vector<2x128xi32> to vector<1x128xi32>
    %14 = vector.shape_cast %13 : vector<1x128xi32> to vector<1x128xi32>
    %15 = vector.broadcast %14 : vector<1x128xi32> to vector<8x128xi32>
    %16 = vector.extract_strided_slice %7 {offsets = [1, 0], sizes = [1, 128], strides = [1, 1]} : vector<2x128xi32> to vector<1x128xi32>
    %17 = vector.shape_cast %16 : vector<1x128xi32> to vector<1x128xi32>
    %18 = vector.broadcast %17 : vector<1x128xi32> to vector<8x128xi32>
    %19 = arith.select %12, %15, %18 : vector<8x128xi1>, vector<8x128xi32>
    %c1_i32_3 = arith.constant 1 : i32
    %20 = vector.broadcast %c1_i32_3 : i32 to vector<8x128xi32>
    %21 = arith.shrsi %8, %20 : vector<8x128xi32>
    %c0_i32_4 = arith.constant 0 : i32
    %22 = vector.broadcast %c0_i32_4 : i32 to vector<8x128xi32>
    %23 = arith.cmpi eq, %21, %22 : vector<8x128xi32>
    %c255_i32 = arith.constant 255 : i32
    %24 = vector.broadcast %c255_i32 : i32 to vector<8x128xi32>
    %25 = arith.andi %19, %24 : vector<8x128xi32>
    %c1_i32_5 = arith.constant 1 : i32
    %26 = vector.broadcast %c1_i32_5 : i32 to vector<8x128xi32>
    %27 = arith.cmpi eq, %21, %26 : vector<8x128xi32>
    %c8_i32 = arith.constant 8 : i32
    %28 = vector.broadcast %c8_i32 : i32 to vector<8x128xi32>
    %29 = arith.shrsi %19, %28 : vector<8x128xi32>
    %c255_i32_6 = arith.constant 255 : i32
    %30 = vector.broadcast %c255_i32_6 : i32 to vector<8x128xi32>
    %31 = arith.andi %29, %30 : vector<8x128xi32>
    %c2_i32 = arith.constant 2 : i32
    %32 = vector.broadcast %c2_i32 : i32 to vector<8x128xi32>
    %33 = arith.cmpi eq, %21, %32 : vector<8x128xi32>
    %c16_i32 = arith.constant 16 : i32
    %34 = vector.broadcast %c16_i32 : i32 to vector<8x128xi32>
    %35 = arith.shrsi %19, %34 : vector<8x128xi32>
    %c255_i32_7 = arith.constant 255 : i32
    %36 = vector.broadcast %c255_i32_7 : i32 to vector<8x128xi32>
    %37 = arith.andi %35, %36 : vector<8x128xi32>
    %c24_i32 = arith.constant 24 : i32
    %38 = vector.broadcast %c24_i32 : i32 to vector<8x128xi32>
    %39 = arith.shrsi %19, %38 : vector<8x128xi32>
    %c255_i32_8 = arith.constant 255 : i32
    %40 = vector.broadcast %c255_i32_8 : i32 to vector<8x128xi32>
    %41 = arith.andi %39, %40 : vector<8x128xi32>
    %42 = arith.select %33, %37, %41 : vector<8x128xi1>, vector<8x128xi32>
    %43 = arith.select %27, %31, %42 : vector<8x128xi1>, vector<8x128xi32>
    %44 = arith.select %23, %25, %43 : vector<8x128xi1>, vector<8x128xi32>
    %45 = arith.sitofp %44 : vector<8x128xi32> to vector<8x128xbf16>
    %cst = arith.constant dense<0.000000e+00> : vector<8x128xf32>
    %46 = tpu.matmul %45, %6, %cst {dimension_numbers = #tpu.dot_dimension_numbers<[1], [0], [0], [1], [0, 0, 1, 1], [], []>} : vector<8x128xbf16>, vector<128x128xbf16>, vector<8x128xf32> -> vector<8x128xf32>
    %47 = arith.fptosi %46 : vector<8x128xf32> to vector<8x128xi32>
    %48 = vector.extract_strided_slice %47 {offsets = [0, 0], sizes = [1, 128], strides = [1, 1]} : vector<8x128xi32> to vector<1x128xi32>
    %49 = vector.extract_strided_slice %47 {offsets = [2, 0], sizes = [1, 128], strides = [1, 1]} : vector<8x128xi32> to vector<1x128xi32>
    %c8_i32_9 = arith.constant 8 : i32
    %50 = vector.broadcast %c8_i32_9 : i32 to vector<1x128xi32>
    %51 = arith.shli %49, %50 : vector<1x128xi32>
    %52 = arith.ori %48, %51 : vector<1x128xi32>
    %53 = vector.extract_strided_slice %47 {offsets = [4, 0], sizes = [1, 128], strides = [1, 1]} : vector<8x128xi32> to vector<1x128xi32>
    %c16_i32_10 = arith.constant 16 : i32
    %54 = vector.broadcast %c16_i32_10 : i32 to vector<1x128xi32>
    %55 = arith.shli %53, %54 : vector<1x128xi32>
    %56 = arith.ori %52, %55 : vector<1x128xi32>
    %57 = vector.extract_strided_slice %47 {offsets = [6, 0], sizes = [1, 128], strides = [1, 1]} : vector<8x128xi32> to vector<1x128xi32>
    %c24_i32_11 = arith.constant 24 : i32
    %58 = vector.broadcast %c24_i32_11 : i32 to vector<1x128xi32>
    %59 = arith.shli %57, %58 : vector<1x128xi32>
    %60 = arith.ori %56, %59 : vector<1x128xi32>
    %61 = vector.extract_strided_slice %47 {offsets = [1, 0], sizes = [1, 128], strides = [1, 1]} : vector<8x128xi32> to vector<1x128xi32>
    %62 = vector.extract_strided_slice %47 {offsets = [3, 0], sizes = [1, 128], strides = [1, 1]} : vector<8x128xi32> to vector<1x128xi32>
    %c8_i32_12 = arith.constant 8 : i32
    %63 = vector.broadcast %c8_i32_12 : i32 to vector<1x128xi32>
    %64 = arith.shli %62, %63 : vector<1x128xi32>
    %65 = arith.ori %61, %64 : vector<1x128xi32>
    %66 = vector.extract_strided_slice %47 {offsets = [5, 0], sizes = [1, 128], strides = [1, 1]} : vector<8x128xi32> to vector<1x128xi32>
    %c16_i32_13 = arith.constant 16 : i32
    %67 = vector.broadcast %c16_i32_13 : i32 to vector<1x128xi32>
    %68 = arith.shli %66, %67 : vector<1x128xi32>
    %69 = arith.ori %65, %68 : vector<1x128xi32>
    %70 = vector.extract_strided_slice %47 {offsets = [7, 0], sizes = [1, 128], strides = [1, 1]} : vector<8x128xi32> to vector<1x128xi32>
    %c24_i32_14 = arith.constant 24 : i32
    %71 = vector.broadcast %c24_i32_14 : i32 to vector<1x128xi32>
    %72 = arith.shli %70, %71 : vector<1x128xi32>
    %73 = arith.ori %69, %72 : vector<1x128xi32>
    %c0_15 = arith.constant 0 : index
    %c0_16 = arith.constant 0 : index
    %74 = vector.load %arg3[%c0_15, %c0_16] : memref<2x128xi32, #tpu.memory_space<vmem>>, vector<1x128xi32>
    tpu.vector_store %arg3[%c0_15, %c0_16], %60 {strides = array<i32>} : memref<2x128xi32, #tpu.memory_space<vmem>>, vector<1x128xi32>,
    %c1 = arith.constant 1 : index
    %c0_17 = arith.constant 0 : index
    %75 = vector.load %arg3[%c1, %c0_17] : memref<2x128xi32, #tpu.memory_space<vmem>>, vector<1x128xi32>
    tpu.vector_store %arg3[%c1, %c0_17], %73 {strides = array<i32>} : memref<2x128xi32, #tpu.memory_space<vmem>>, vector<1x128xi32>,
    return
  }
  func.func @transform_0(%arg0: i32) -> (i32, i32) {
    %c0_i32 = arith.constant 0 : i32
    %c0_i32_0 = arith.constant 0 : i32
    return %arg0, %c0_i32 : i32, i32
  }
  func.func @transform_1(%arg0: i32) -> (i32, i32) {
    %c0_i32 = arith.constant 0 : i32
    %c0_i32_0 = arith.constant 0 : i32
    return %c0_i32, %arg0 : i32, i32
  }
  func.func @transform_2(%arg0: i32) -> (i32, i32) {
    %c0_i32 = arith.constant 0 : i32
    %c0_i32_0 = arith.constant 0 : i32
    return %c0_i32, %arg0 : i32, i32
  }
}

</mosaic_0001>

<bundles_post_ra>
// kernel: custom-call.1
= control target key start
LH: loop header
LB: loop body
LE: loop exit
PB: predicated region body
PF: predicated region fallthrough
CT: control target
= control target key end

     0   :  { %s6_s0 = inlined_call_operand.vmem [shape: u32[384], index: 0, kind: output, shape index: {}]  }

// kernel: edge_drop_edges.1
= control target key start
LH: loop header
LB: loop body
LE: loop exit
PB: predicated region body
PF: predicated region fallthrough
CT: control target
= control target key end

     0   :  { %s547_s9 = smov 0   ;;  %s632_s0 = inlined_call_operand.vmem [shape: s32[384,1], index: 0, kind: input, shape index: {}]   ;;  %s633_s1 = inlined_call_operand.vmem [shape: s32[2,384], index: 1, kind: input, shape index: {}]   ;;  %s634_s2 = inlined_call_operand.vmem [shape: s32[2,384], index: 2, kind: output, shape index: {}]  }
   0x1 LB: > { %s553_s10 = sadd.s32 4294967295, %s526_s9   ;;  %p435_p0 = scmp.ge.s32.totalorder %s526_s9, 1  ;;  %s526_s9 = sphi %s547_s9, %s12_s9  }
   0x2   : > { %p122_p1 = scmp.lt.s32.totalorder %s526_s9, 4 }
   0x4   : > { %p123_p2 = pnand %p435_p0, %p122_p1 }
   0x5   : > { %s436_s11 = sshll.u32 (!%p123_p2), %s553_s10, 4  ;;  %p153_p4 = scmp.lt.s32.totalorder (!%p123_p2), %s553_s10, 2 }
   0x6   : > { %126 = sbr.rel (%p123_p2) target bundleno = 384 (0x180), region = 28  ;;  %p148_p3 = scmp.lt.s32.totalorder (!%p123_p2), %s436_s11, 47 }
   0xb   : > { %v528_v0 = vmov 0   ;;  %s636_s11 = smov (!%p148_p3, %s436_s11), 47  ;;  %v529_v5 = vmov 0.0   ;;  %vm530_vm0 = vmmov 0   ;;  %s638_s10 = smov (!%p153_p4, %s553_s10), 2  ;;  %v162_v18 = vlaneseq }
   0xc   : > { %519 = vset.pattern.permute.xlu1 %v528_v0  ;;  %518 = vset.pattern.permute.xlu0 %v528_v0  ;;  %s437_s12 = sshll.u32 %s636_s11, 3  ;;  %s438_s16 = sshll.u32 %s638_s10, 1  ;;  %v531_v31 = vmov 1.0|1.0  }
   0xd   : > { %s561_s15 = scalar_lea.vmem %s632_s0, %s437_s12  ;;  %484 = vmatprep.subr.bf16.mxu0 %v529_v5  ;;  %500 = vmatprep.mubr.msk.bf16.mxu0 %vm530_vm0, %v529_v5  ;;  %v286_v19 = vshrl.u32 %v162_v18, 7  ;;  %s156_s19 = scalar_lea.vmem %s633_s1, %s438_s16  ;;  %v591_v22 = vand.u32 127, %v162_v18 }
   0xe   : > { %v178_v1 = vld [vmem:[%s561_s15 + $0x70] sm:$0xff]  ;;  %v176_v2 = vld [vmem:[%s561_s15 + $0x60] sm:$0xff]  ;;  %v179_v3 = vld [vmem:[%s561_s15 + $0x78] sm:$0xff]  ;;  %s160_s22 = scalar_lea.vmem %s634_s2, %s438_s16 }
   0xf   : > { %223 = vperm.xlu0 %518, %v178_v1   ;;  %217 = vperm.xlu1 %519, %v176_v2   ;;  %v177_v4 = vld [vmem:[%s561_s15 + $0x68] sm:$0xff]  ;;  %v175_v6 = vld [vmem:[%s561_s15 + $0x58] sm:$0xff]  ;;  %v174_v7 = vld [vmem:[%s561_s15 + $0x50] sm:$0xff]  ;;  %v291_v23 = vsub.s32 0, %v286_v19  ;;  %v295_v24 = vsub.s32 1, %v286_v19  ;;  %v287_v26 = vand.u32 1, %v286_v19 }
  0x10   : > { %v173_v8 = vld [vmem:[%s561_s15 + $0x48] sm:$0xff]  ;;  %v172_v9 = vld [vmem:[%s561_s15 + $0x40] sm:$0xff]  ;;  %v171_v10 = vld [vmem:[%s561_s15 + $0x38] sm:$0xff]  ;;  %v298_v38 = vshra.s32 %v286_v19, 1 }
  0x11   : > { %v170_v11 = vld [vmem:[%s561_s15 + $0x30] sm:$0xff]  ;;  %v169_v12 = vld [vmem:[%s561_s15 + $0x28] sm:$0xff]  ;;  %v168_v13 = vld [vmem:[%s561_s15 + $0x20] sm:$0xff]  ;;  %vm288_vm6 = vcmp.eq.s32.totalorder %v287_v26, 0 }
  0x12   : > { %v167_v14 = vld [vmem:[%s561_s15 + $0x18] sm:$0xff]  ;;  %v166_v15 = vld [vmem:[%s561_s15 + $0x10] sm:$0xff]  ;;  %v165_v16 = vld [vmem:[%s561_s15 + $0x8] sm:$0xff]  ;;  %vm304_vm14 = vcmp.eq.s32.totalorder %v298_v38, 2 }
  0x13   : > { %226 = vperm.xlu0 %518, %v179_v3   ;;  %220 = vperm.xlu1 %519, %v177_v4   ;;  %v164_v17 = vld [vmem:[%s561_s15] sm:$0xff] }
  0x14   : > { %v284_v25 = vld [vmem:[%s156_s19] sm:$0x3] }
  0x15   : > { %v292_v29 = vrot.slane %v284_v25, %v291_v23  ;;  %v296_v30 = vrot.slane %v284_v25, %v295_v24 }
  0x17   : > { %214 = vperm.xlu1 %519, %v175_v6   ;;  %211 = vperm.xlu0 %518, %v174_v7   ;;  %v297_v34 = vsel %vm288_vm6, %v292_v29, %v296_v30 }
  0x18   : > { %v305_v37 = vshra.s32 %v297_v34, 16  ;;  %v302_v41 = vshra.s32 %v297_v34, 8  ;;  %v456_v43 = vshrl.u32 %v297_v34, 24  ;;  %v300_v48 = vand.u32 255, %v297_v34 }
  0x1a   : > { %v306_v42 = vand.u32 255, %v305_v37  ;;  %v303_v46 = vand.u32 255, %v302_v41 }
  0x1b   : > { %208 = vperm.xlu1 %519, %v173_v8   ;;  %205 = vperm.xlu0 %518, %v172_v9  }
  0x1c   : > { %v309_v47 = vsel %vm304_vm14, %v306_v42, %v456_v43 }
  0x1f   : > { %202 = vperm.xlu1 %519, %v171_v10   ;;  %199 = vperm.xlu0 %518, %v170_v11  }
  0x23   : > { %196 = vperm.xlu1 %519, %v169_v12   ;;  %193 = vperm.xlu0 %518, %v168_v13  }
  0x27   : > { %190 = vperm.xlu1 %519, %v167_v14   ;;  %187 = vperm.xlu0 %518, %v166_v15  }
  0x2b   : > { %184 = vperm.xlu1 %519, %v165_v16   ;;  %181 = vperm.xlu0 %518, %v164_v17  }
  0x8a   : > { %v224_v20 = vpop.permute.xlu0 %223  ;;  %v218_v21 = vpop.permute.xlu1 %217 }
  0x8b   : > { %vm242_vm1 = vcmp.eq.s32.totalorder %v224_v20, %v591_v22  ;;  %vm240_vm4 = vcmp.eq.s32.totalorder %v218_v21, %v591_v22 }
  0x8e   : > { %v227_v27 = vpop.permute.xlu0 %226  ;;  %v221_v28 = vpop.permute.xlu1 %220 }
  0x8f   : > { %vm243_vm2 = vcmp.eq.s32.totalorder %v227_v27, %v591_v22  ;;  %vm241_vm5 = vcmp.eq.s32.totalorder %v221_v28, %v591_v22 }
  0x90   : > { %vm457_vm3 = vmpackc.low %vm243_vm2, %vm242_vm1  ;;  %vm301_vm1 = vcmp.eq.s32.totalorder %v298_v38, 1 }
  0x91   : > { %485 = vmatpush3.bf16.msk.msra.mxu0 %vm457_vm3, %v531_v31  ;;  %vm459_vm7 = vmpackc.low %vm241_vm5, %vm240_vm4  ;;  %vm299_vm5 = vcmp.eq.s32.totalorder %v298_v38, 0  ;;  %v310_v51 = vsel %vm301_vm1, %v303_v46, %v309_v47 }
  0x92   : > { %v215_v32 = vpop.permute.xlu1 %214  ;;  %v212_v33 = vpop.permute.xlu0 %211  ;;  %486 = vmatprep.subr.bf16.mxu0 %v529_v5  ;;  %v311_v52 = vsel %vm299_vm5, %v300_v48, %v310_v51 }
  0x93   : > { %vm239_vm8 = vcmp.eq.s32.totalorder %v215_v32, %v591_v22  ;;  %vm238_vm9 = vcmp.eq.s32.totalorder %v212_v33, %v591_v22  ;;  %v312_v55 = vcvt.s32.f32 %v311_v52 }
  0x94   : > { %vm461_vm10 = vmpackc.low %vm239_vm8, %vm238_vm9 }
  0x95   : > { %487 = vmatpush3.bf16.msk.msra.mxu0 %vm459_vm7, %v531_v31  ;;  %v313_v56 = vpack.c.bf16 %v312_v55, %v312_v55 }
  0x96   : > { %v209_v35 = vpop.permute.xlu1 %208  ;;  %v206_v36 = vpop.permute.xlu0 %205  ;;  %488 = vmatprep.subr.bf16.mxu0 %v529_v5 }
  0x97   : > { %vm237_vm11 = vcmp.eq.s32.totalorder %v209_v35, %v591_v22  ;;  %vm236_vm12 = vcmp.eq.s32.totalorder %v206_v36, %v591_v22 }
  0x98   : > { %vm463_vm13 = vmpackc.low %vm237_vm11, %vm236_vm12 }
  0x99   : > { %489 = vmatpush3.bf16.msk.msra.mxu0 %vm461_vm10, %v531_v31 }
  0x9a   : > { %v203_v39 = vpop.permute.xlu1 %202  ;;  %v200_v40 = vpop.permute.xlu0 %199  ;;  %490 = vmatprep.subr.bf16.mxu0 %v529_v5 }
  0x9b   : > { %vm235_vm15 = vcmp.eq.s32.totalorder %v203_v39, %v591_v22  ;;  %vm234_vm0 = vcmp.eq.s32.totalorder %v200_v40, %v591_v22 }
  0x9c   : > { %vm465_vm2 = vmpackc.low %vm235_vm15, %vm234_vm0 }
  0x9d   : > { %491 = vmatpush3.bf16.msk.msra.mxu0 %vm463_vm13, %v531_v31 }
  0x9e   : > { %v197_v44 = vpop.permute.xlu1 %196  ;;  %v194_v45 = vpop.permute.xlu0 %193  ;;  %492 = vmatprep.subr.bf16.mxu0 %v529_v5 }
  0x9f   : > { %vm233_vm3 = vcmp.eq.s32.totalorder %v197_v44, %v591_v22  ;;  %vm232_vm4 = vcmp.eq.s32.totalorder %v194_v45, %v591_v22 }
  0xa0   : > { %vm467_vm6 = vmpackc.low %vm233_vm3, %vm232_vm4 }
  0xa1   : > { %493 = vmatpush3.bf16.msk.msra.mxu0 %vm465_vm2, %v531_v31 }
  0xa2   : > { %v191_v49 = vpop.permute.xlu1 %190  ;;  %v188_v50 = vpop.permute.xlu0 %187  ;;  %494 = vmatprep.subr.bf16.mxu0 %v529_v5 }
  0xa3   : > { %vm231_vm7 = vcmp.eq.s32.totalorder %v191_v49, %v591_v22  ;;  %vm230_vm8 = vcmp.eq.s32.totalorder %v188_v50, %v591_v22 }
  0xa4   : > { %vm469_vm9 = vmpackc.low %vm231_vm7, %vm230_vm8 }
  0xa5   : > { %495 = vmatpush3.bf16.msk.msra.mxu0 %vm467_vm6, %v531_v31 }
  0xa6   : > { %v185_v53 = vpop.permute.xlu1 %184  ;;  %v182_v54 = vpop.permute.xlu0 %181  ;;  %496 = vmatprep.subr.bf16.mxu0 %v529_v5 }
  0xa7   : > { %vm229_vm10 = vcmp.eq.s32.totalorder %v185_v53, %v591_v22  ;;  %vm228_vm11 = vcmp.eq.s32.totalorder %v182_v54, %v591_v22 }
  0xa8   : > { %vm471_vm12 = vmpackc.low %vm229_vm10, %vm228_vm11 }
  0xa9   : > { %497 = vmatpush3.bf16.msk.msra.mxu0 %vm469_vm9, %v531_v31 }
  0xaa   : > { %498 = vmatprep.subr.bf16.mxu0 %v529_v5 }
  0xad   : > { %499 = vmatpush3.bf16.msk.msra.mxu0 %vm471_vm12, %v531_v31 }
  0xb0   : > { %501 = vmatmul.mubr.bf16.vlgmr.msra.gmra.mxu0 %v313_v56 }
 0x170   : > { %v348_v57 = vpop.f32.mrf.mxu0 }
 0x171   : > { %v504_v58 = vtrunc.f32 %v348_v57 }
 0x172   : > { %v502_v59 = vpop.f32.mrf.mxu0 }
 0x173   : > { %v505_v60 = vcvt.f32.s32 %v504_v58 }
 0x174   : > { %v351_v61 = vpop.f32.mrf.mxu0 }
 0x175   : > { %v355_v62 = vshll.u32 %v505_v60, 8  ;;  %v358_v63 = vshll.u32 %v505_v60, 16  ;;  %v361_v2 = vshll.u32 %v505_v60, 24 }
 0x176   : > { %v503_v0 = vpop.f32.mrf.mxu0 }
 0x177   : > { %v356_v1 = vrot.slane %v355_v62, 2  ;;  %v359_v4 = vrot.slane %v358_v63, 4  ;;  %v362_v5 = vrot.slane %v361_v2, 6 }
 0x179   : > { %v357_v3 = vor.u32 %v505_v60, %v356_v1 }
 0x17b   : > { %v360_v6 = vor.u32 %v359_v4, %v357_v3 }
 0x17d   : > { %v363_v7 = vor.u32 %v362_v5, %v360_v6 }
 0x17f   : > { %364 = vst [vmem:[%s160_s22] sm:$0x3] %v363_v7  }
 0x180 PF: > { %s12_s9 = sadd.s32 1, %s526_s9  }
 0x181   : > { %p9_p5 = scmp.ge.s32.totalorder %s12_s9, 5  }
 0x183   :  { %11 = sbr.rel (!%p9_p5) target bundleno = 1 (0x1), region = 61 }

</bundles_post_ra>
